<compile_context>
chip_gen: v7x
topology: tpu7x:2x2x1
jax: 0.10.0
libtpu: 0.0.40
codegen_flags: <defaults>
</compile_context>

<pallas_src>
import functools

import jax
import jax.numpy as jnp
import numpy as np
from jax.experimental import pallas as pl
from jax.experimental.pallas import tpu as pltpu


def score_kernel(seq_ref, mask_ref, wT_ref, b_ref, wpos_ref, out_ref, *, la):
    # seq_ref : (Bt*L, Hp)  fused (answer|passage) activations, compute dtype
    # mask_ref: (Bt, L)     1.0 = padding, 0.0 = real token (f32)
    # wT_ref  : (Hp, Hp)    shared Linear weight, transposed (y = x @ wT + b)
    # b_ref   : (1, Hp)     shared Linear bias (f32)
    # wpos_ref: (L, Hp)     per-position scorer row (wa for l<la, wp otherwise)
    # out_ref : (Bt, 1)     per-batch score
    bt, L = mask_ref.shape
    hp = seq_ref.shape[-1]

    # Shared Linear + ReLU for the whole batch tile in one MXU matmul.
    h = jnp.dot(seq_ref[...], wT_ref[...], preferred_element_type=jnp.float32)
    h = jnp.maximum(h + b_ref[...], 0.0)              # (Bt*L, Hp), f32 on the VPU
    h3 = h.reshape(bt, L, hp)                         # L % 8 == 0 -> aligned split

    # Per-position scorer. The nn.Linear(H, 1) biases are constant within a
    # segment and cancel inside softmax, so they are dropped.
    scores = jnp.sum(h3 * wpos_ref[...], axis=-1)     # (Bt, L), L lane-major

    pos = jax.lax.broadcasted_iota(jnp.int32, (bt, L), 1)
    valid = mask_ref[...] <= 0.0
    neg = jnp.float32(-1e30)                          # finite fill: no NaN on all-pad rows
    s_a = jnp.where(jnp.logical_and(pos < la, valid), scores, neg)
    s_p = jnp.where(jnp.logical_and(pos >= la, valid), scores, neg)

    def lane_softmax(s):                              # softmax along the lane axis (L)
        m = jnp.max(s, axis=-1, keepdims=True)
        e = jnp.exp(s - m)
        denom = jnp.sum(e, axis=-1, keepdims=True)
        return e * pl.reciprocal(denom, approx=True)

    alpha_a = lane_softmax(s_a)[:, None, :]           # (Bt, 1, L)
    alpha_p = lane_softmax(s_p)[:, None, :]           # (Bt, 1, L)

    # Attention pooling as batched (1, L) @ (L, Hp) matmuls on the MXU.
    va = jnp.einsum('bql,blh->bqh', alpha_a, h3, preferred_element_type=jnp.float32)
    vp = jnp.einsum('bql,blh->bqh', alpha_p, h3, preferred_element_type=jnp.float32)

    # Final bmm: per-batch dot product of the two attended vectors.
    out_ref[...] = jnp.sum(va[:, 0, :] * vp[:, 0, :], axis=-1, keepdims=True)


def score_layer(passage, passage_mask, answer, answer_mask, params,
                compute_dtype=jnp.bfloat16, block_b=None):
    """Pallas implementation of ScoreLayer.forward. Returns (B, 1) float32."""
    wT, bias, wa, ba, wp, bp = params
    del ba, bp                                  # softmax-invariant (cancel exactly)
    B, Lp, H = passage.shape
    La = answer.shape[1]
    L0 = La + Lp
    L = ((L0 + 7) // 8) * 8                     # sublane-align the fused seq axis
    Hp = ((H + 127) // 128) * 128               # lane-pad hidden dim to 128

    def pad_axis(x, target, axis, value=0.0):
        pad = target - x.shape[axis]
        if pad <= 0:
            return x
        widths = [(0, 0)] * x.ndim
        widths[axis] = (0, pad)
        return jnp.pad(x, widths, constant_values=value)

    f32 = jnp.float32
    wT_p = pad_axis(pad_axis(wT.astype(f32), Hp, 0), Hp, 1)            # (Hp, Hp)
    bias_p = pad_axis(bias.astype(f32).reshape(1, H), Hp, 1)           # (1, Hp)
    wa_p = pad_axis(wa.astype(f32).reshape(1, H), Hp, 1)               # (1, Hp)
    wp_p = pad_axis(wp.astype(f32).reshape(1, H), Hp, 1)               # (1, Hp)
    # per-position scorer rows: answer positions use wa, passage positions wp
    wpos = jnp.concatenate([jnp.broadcast_to(wa_p, (La, Hp)),
                            jnp.broadcast_to(wp_p, (Lp, Hp))], axis=0)
    wpos = pad_axis(wpos, L, 0)                                        # (L, Hp)

    # Fuse answer + passage into one sequence and one mask (1.0 = padding).
    seq = jnp.concatenate([pad_axis(answer.astype(f32), Hp, 2),
                           pad_axis(passage.astype(f32), Hp, 2)], axis=1)
    seq = pad_axis(seq, L, 1)                                          # (B, L, Hp)
    mask = jnp.concatenate([answer_mask.astype(f32).reshape(B, La),
                            passage_mask.astype(f32).reshape(B, Lp)], axis=1)
    mask = pad_axis(mask, L, 1, value=1.0)                             # (B, L)

    # Batch tile: as large as fits a conservative VMEM budget (v7x: 64 MiB
    # physical), a multiple of 8, and >= 2 grid steps when B allows (v7x: 2 TCs).
    in_item = jnp.dtype(compute_dtype).itemsize
    if block_b is None:
        per_row = L * Hp * (2 * in_item + 2 * 4)   # double-buffered input + f32 temps
        bt = 128
        while bt > 8 and bt * per_row > 24 * 1024 * 1024:
            bt //= 2
        bt = min(bt, ((B + 7) // 8) * 8)
        if B > 8 and (B + bt - 1) // bt < 2:
            bt = max(8, ((((B + 1) // 2) + 7) // 8) * 8)
        block_b = max(8, bt)
    nb = (B + block_b - 1) // block_b
    B_pad = nb * block_b

    def pad_batch(x):
        if B_pad == B:
            return x
        widths = [(0, B_pad - B)] + [(0, 0)] * (x.ndim - 1)
        return jnp.pad(x, widths)

    seq2d = pad_batch(seq).reshape(B_pad * L, Hp).astype(compute_dtype)
    mask_p = pad_batch(mask)
    wT_c = wT_p.astype(compute_dtype)

    kernel = functools.partial(score_kernel, la=La)

    out = pl.pallas_call(
        kernel,
        out_shape=jax.ShapeDtypeStruct((B_pad, 1), jnp.float32),
        grid_spec=pltpu.PrefetchScalarGridSpec(
            num_scalar_prefetch=0,
            grid=(nb,),
            in_specs=[
                pl.BlockSpec((block_b * L, Hp), lambda i: (i, 0)),   # fused activations
                pl.BlockSpec((block_b, L), lambda i: (i, 0)),        # fused padding mask
                pl.BlockSpec((Hp, Hp), lambda i: (0, 0)),            # shared Linear weight^T
                pl.BlockSpec((1, Hp), lambda i: (0, 0)),             # shared Linear bias
                pl.BlockSpec((L, Hp), lambda i: (0, 0)),             # per-position scorer rows
            ],
            out_specs=pl.BlockSpec((block_b, 1), lambda i: (i, 0)),
        ),
        compiler_params=pltpu.CompilerParams(
            dimension_semantics=("parallel",),
            vmem_limit_bytes=48 * 1024 * 1024,      # explicit: v7x has 64 MiB VMEM
        ),
    )(seq2d, mask_p, wT_c, bias_p, wpos)
    return out[:B]


def ref_forward(passage, passage_mask, answer, answer_mask, params):
    """Pure-JAX reference of the PyTorch forward."""
    wT, bias, wa, ba, wp, bp = params
    a = jax.nn.relu(answer @ wT + bias)
    p = jax.nn.relu(passage @ wT + bias)

    def attn(h, mask, w, b0):
        scores = jnp.einsum('blh,h->bl', h, w.reshape(-1)) + b0.reshape(())
        scores = jnp.where(mask > 0, -jnp.inf, scores)
        alpha = jax.nn.softmax(scores, axis=-1)
        return jnp.einsum('bl,blh->bh', alpha, h)

    va = attn(a, answer_mask.astype(jnp.float32), wa, ba)
    vp = attn(p, passage_mask.astype(jnp.float32), wp, bp)
    return jnp.sum(va * vp, axis=-1, keepdims=True)          # (B, 1)


if __name__ == "__main__":
    B, Lp, La, H = 2, 16, 8, 32

    key = jax.random.PRNGKey(0)
    k = jax.random.split(key, 10)

    scale = 1.0 / np.sqrt(H)
    wT = jax.random.uniform(k[0], (H, H), jnp.float32, -scale, scale)   # shared Linear (transposed)
    bias = jax.random.uniform(k[1], (H,), jnp.float32, -scale, scale)
    wa = jax.random.uniform(k[2], (1, H), jnp.float32, -scale, scale)   # answer_self_attn.linear1
    ba = jax.random.uniform(k[3], (1,), jnp.float32, -scale, scale)
    wp = jax.random.uniform(k[4], (1, H), jnp.float32, -scale, scale)   # passage_self_attn.linear1
    bp = jax.random.uniform(k[5], (1,), jnp.float32, -scale, scale)
    params = (wT, bias, wa, ba, wp, bp)

    passage = jax.random.normal(k[6], (B, Lp, H), jnp.float32)
    answer = jax.random.normal(k[7], (B, La, H), jnp.float32)
    # masks: 1 = padding, 0 = valid (each row has at least one valid token)
    p_valid = jnp.array([12, 16])
    a_valid = jnp.array([6, 8])
    passage_mask = (jnp.arange(Lp)[None, :] >= p_valid[:, None]).astype(jnp.float32)
    answer_mask = (jnp.arange(La)[None, :] >= a_valid[:, None]).astype(jnp.float32)

    ref = ref_forward(passage, passage_mask, answer, answer_mask, params)

    # f32 matmul path
    out_f32 = score_layer(passage, passage_mask, answer, answer_mask, params,
                          compute_dtype=jnp.float32)
    out_f32 = jax.block_until_ready(out_f32)
    np.testing.assert_allclose(np.asarray(out_f32), np.asarray(ref), rtol=1e-2, atol=1e-2)

    # bf16 matmul path (default; MXU-native on v5e/v6e/v7x) — looser tolerance
    out_bf16 = score_layer(passage, passage_mask, answer, answer_mask, params,
                           compute_dtype=jnp.bfloat16)
    out_bf16 = jax.block_until_ready(out_bf16)
    np.testing.assert_allclose(np.asarray(out_bf16), np.asarray(ref), rtol=5e-2, atol=1e-1)

    print("KERNEL_OK")
</pallas_src>

<mosaic_0001>
module attributes {stable_mosaic.version = 11 : i64} {
  func.func @score_kernel(%arg0: i32, %arg1: memref<192x128xf32, #tpu.memory_space<vmem>>, %arg2: memref<8x24xf32, #tpu.memory_space<vmem>>, %arg3: memref<128x128xf32, #tpu.memory_space<vmem>>, %arg4: memref<1x128xf32, #tpu.memory_space<vmem>>, %arg5: memref<24x128xf32, #tpu.memory_space<vmem>>, %arg6: memref<8x1xf32, #tpu.memory_space<vmem>>) attributes {dimension_semantics = [#tpu.dimension_semantics<parallel>], iteration_bounds = array<i64: 1>, scalar_prefetch = 0 : i64, scratch_operands = 0 : i64, tpu.core_type = #tpu.core_type<tc>, window_params = [{transform_indices = @transform_0, window_bounds = array<i64: 192, 128>}, {transform_indices = @transform_1, window_bounds = array<i64: 8, 24>}, {pipeline_mode = #tpu.pipeline_mode<synchronous>, transform_indices = @transform_2, window_bounds = array<i64: 128, 128>}, {pipeline_mode = #tpu.pipeline_mode<synchronous>, transform_indices = @transform_3, window_bounds = array<i64: 1, 128>}, {pipeline_mode = #tpu.pipeline_mode<synchronous>, transform_indices = @transform_4, window_bounds = array<i64: 24, 128>}, {transform_indices = @transform_5, window_bounds = array<i64: 8, 1>}]} {
    %c0 = arith.constant 0 : index
    %c0_0 = arith.constant 0 : index
    %0 = vector.load %arg1[%c0, %c0_0] : memref<192x128xf32, #tpu.memory_space<vmem>>, vector<192x128xf32>
    %c0_1 = arith.constant 0 : index
    %c0_2 = arith.constant 0 : index
    %1 = vector.load %arg3[%c0_1, %c0_2] : memref<128x128xf32, #tpu.memory_space<vmem>>, vector<128x128xf32>
    %cst = arith.constant dense<0.000000e+00> : vector<192x128xf32>
    %2 = tpu.matmul %0, %1, %cst {dimension_numbers = #tpu.dot_dimension_numbers<[1], [0], [0], [1], [0, 0, 1, 1], [], []>} : vector<192x128xf32>, vector<128x128xf32>, vector<192x128xf32> -> vector<192x128xf32>
    %c0_3 = arith.constant 0 : index
    %c0_4 = arith.constant 0 : index
    %3 = vector.load %arg4[%c0_3, %c0_4] : memref<1x128xf32, #tpu.memory_space<vmem>>, vector<1x128xf32>
    %4 = vector.broadcast %3 : vector<1x128xf32> to vector<192x128xf32>
    %5 = arith.addf %2, %4 : vector<192x128xf32>
    %cst_5 = arith.constant 0.000000e+00 : f32
    %6 = vector.broadcast %cst_5 : f32 to vector<192x128xf32>
    %7 = arith.maximumf %5, %6 : vector<192x128xf32>
    %8 = vector.shape_cast %7 : vector<192x128xf32> to vector<8x24x128xf32>
    %c0_6 = arith.constant 0 : index
    %c0_7 = arith.constant 0 : index
    %9 = vector.load %arg5[%c0_6, %c0_7] : memref<24x128xf32, #tpu.memory_space<vmem>>, vector<24x128xf32>
    %10 = vector.shape_cast %9 : vector<24x128xf32> to vector<1x24x128xf32>
    %11 = vector.broadcast %10 : vector<1x24x128xf32> to vector<8x24x128xf32>
    %12 = arith.mulf %8, %11 : vector<8x24x128xf32>
    %cst_8 = arith.constant dense<0.000000e+00> : vector<8x24xf32>
    %13 = vector.multi_reduction <add>, %12, %cst_8 [2] : vector<8x24x128xf32> to vector<8x24xf32>
    %14 = tpu.iota {dimensions = array<i32: 1>} : vector<8x24xi32>
    %c0_9 = arith.constant 0 : index
    %c0_10 = arith.constant 0 : index
    %15 = vector.load %arg2[%c0_9, %c0_10] : memref<8x24xf32, #tpu.memory_space<vmem>>, vector<8x24xf32>
    %cst_11 = arith.constant 0.000000e+00 : f32
    %16 = vector.broadcast %cst_11 : f32 to vector<8x24xf32>
    %17 = arith.cmpf ole, %15, %16 : vector<8x24xf32>
    %c8_i32 = arith.constant 8 : i32
    %18 = vector.broadcast %c8_i32 : i32 to vector<8x24xi32>
    %19 = arith.cmpi slt, %14, %18 : vector<8x24xi32>
    %20 = arith.andi %19, %17 : vector<8x24xi1>
    %cst_12 = arith.constant -1.000000e+30 : f32
    %21 = vector.broadcast %cst_12 : f32 to vector<8x24xf32>
    %22 = arith.select %20, %13, %21 : vector<8x24xi1>, vector<8x24xf32>
    %c8_i32_13 = arith.constant 8 : i32
    %23 = vector.broadcast %c8_i32_13 : i32 to vector<8x24xi32>
    %24 = arith.cmpi sge, %14, %23 : vector<8x24xi32>
    %25 = arith.andi %24, %17 : vector<8x24xi1>
    %cst_14 = arith.constant -1.000000e+30 : f32
    %26 = vector.broadcast %cst_14 : f32 to vector<8x24xf32>
    %27 = arith.select %25, %13, %26 : vector<8x24xi1>, vector<8x24xf32>
    %cst_15 = arith.constant dense<0xFF800000> : vector<8xf32>
    %28 = vector.multi_reduction <maximumf>, %22, %cst_15 [1] : vector<8x24xf32> to vector<8xf32>
    %29 = vector.shape_cast %28 : vector<8xf32> to vector<8x1xf32>
    %30 = vector.broadcast %29 : vector<8x1xf32> to vector<8x24xf32>
    %31 = arith.subf %22, %30 : vector<8x24xf32>
    %32 = math.exp %31 : vector<8x24xf32>
    %cst_16 = arith.constant dense<0.000000e+00> : vector<8xf32>
    %33 = vector.multi_reduction <add>, %32, %cst_16 [1] : vector<8x24xf32> to vector<8xf32>
    %34 = vector.shape_cast %33 : vector<8xf32> to vector<8x1xf32>
    %35 = tpu.reciprocal %34 {approx = true} : vector<8x1xf32> -> vector<8x1xf32>
    %36 = vector.broadcast %35 : vector<8x1xf32> to vector<8x24xf32>
    %37 = arith.mulf %32, %36 : vector<8x24xf32>
    %38 = vector.shape_cast %37 : vector<8x24xf32> to vector<8x1x24xf32>
    %cst_17 = arith.constant dense<0xFF800000> : vector<8xf32>
    %39 = vector.multi_reduction <maximumf>, %27, %cst_17 [1] : vector<8x24xf32> to vector<8xf32>
    %40 = vector.shape_cast %39 : vector<8xf32> to vector<8x1xf32>
    %41 = vector.broadcast %40 : vector<8x1xf32> to vector<8x24xf32>
    %42 = arith.subf %27, %41 : vector<8x24xf32>
    %43 = math.exp %42 : vector<8x24xf32>
    %cst_18 = arith.constant dense<0.000000e+00> : vector<8xf32>
    %44 = vector.multi_reduction <add>, %43, %cst_18 [1] : vector<8x24xf32> to vector<8xf32>
    %45 = vector.shape_cast %44 : vector<8xf32> to vector<8x1xf32>
    %46 = tpu.reciprocal %45 {approx = true} : vector<8x1xf32> -> vector<8x1xf32>
    %47 = vector.broadcast %46 : vector<8x1xf32> to vector<8x24xf32>
    %48 = arith.mulf %43, %47 : vector<8x24xf32>
    %49 = vector.shape_cast %48 : vector<8x24xf32> to vector<8x1x24xf32>
    "tpu.trace_start"() <{level = 10 : i32, message = "bql,blh->bqh"}> : () -> ()
    %cst_19 = arith.constant dense<0.000000e+00> : vector<8x1x128xf32>
    %50 = tpu.matmul %38, %8, %cst_19 {dimension_numbers = #tpu.dot_dimension_numbers<[2], [1], [1], [2], [0, 0, 0, 1, 1, 2], [0], [0]>} : vector<8x1x24xf32>, vector<8x24x128xf32>, vector<8x1x128xf32> -> vector<8x1x128xf32>
    %cst_20 = arith.constant dense<0.000000e+00> : vector<8x1x128xf32>
    %51 = tpu.matmul %49, %8, %cst_20 {dimension_numbers = #tpu.dot_dimension_numbers<[2], [1], [1], [2], [0, 0, 0, 1, 1, 2], [0], [0]>} : vector<8x1x24xf32>, vector<8x24x128xf32>, vector<8x1x128xf32> -> vector<8x1x128xf32>
    "tpu.trace_stop"() : () -> ()
    %52 = vector.shape_cast %50 : vector<8x1x128xf32> to vector<8x128xf32>
    %53 = vector.shape_cast %51 : vector<8x1x128xf32> to vector<8x128xf32>
    %54 = arith.mulf %52, %53 : vector<8x128xf32>
    %cst_21 = arith.constant dense<0.000000e+00> : vector<8xf32>
    %55 = vector.multi_reduction <add>, %54, %cst_21 [1] : vector<8x128xf32> to vector<8xf32>
    %56 = vector.shape_cast %55 : vector<8xf32> to vector<8x1xf32>
    %c0_22 = arith.constant 0 : index
    %c0_23 = arith.constant 0 : index
    %57 = vector.load %arg6[%c0_22, %c0_23] : memref<8x1xf32, #tpu.memory_space<vmem>>, vector<8x1xf32>
    tpu.vector_store %arg6[%c0_22, %c0_23], %56 {strides = array<i32>} : memref<8x1xf32, #tpu.memory_space<vmem>>, vector<8x1xf32>,
    return
  }
  func.func @transform_0(%arg0: i32) -> (i32, i32) {
    %c0_i32 = arith.constant 0 : i32
    %c0_i32_0 = arith.constant 0 : i32
    return %arg0, %c0_i32 : i32, i32
  }
  func.func @transform_1(%arg0: i32) -> (i32, i32) {
    %c0_i32 = arith.constant 0 : i32
    %c0_i32_0 = arith.constant 0 : i32
    return %arg0, %c0_i32 : i32, i32
  }
  func.func @transform_2(%arg0: i32) -> (i32, i32) {
    %c0_i32 = arith.constant 0 : i32
    %c0_i32_0 = arith.constant 0 : i32
    %c0_i32_1 = arith.constant 0 : i32
    return %c0_i32, %c0_i32_0 : i32, i32
  }
  func.func @transform_3(%arg0: i32) -> (i32, i32) {
    %c0_i32 = arith.constant 0 : i32
    %c0_i32_0 = arith.constant 0 : i32
    %c0_i32_1 = arith.constant 0 : i32
    return %c0_i32, %c0_i32_0 : i32, i32
  }
  func.func @transform_4(%arg0: i32) -> (i32, i32) {
    %c0_i32 = arith.constant 0 : i32
    %c0_i32_0 = arith.constant 0 : i32
    %c0_i32_1 = arith.constant 0 : i32
    return %c0_i32, %c0_i32_0 : i32, i32
  }
  func.func @transform_5(%arg0: i32) -> (i32, i32) {
    %c0_i32 = arith.constant 0 : i32
    %c0_i32_0 = arith.constant 0 : i32
    return %arg0, %c0_i32 : i32, i32
  }
}

</mosaic_0001>

<bundles_post_ra>
// kernel: tpu_custom_call.1
= control target key start
LH: loop header
LB: loop body
LE: loop exit
PB: predicated region body
PF: predicated region fallthrough
CT: control target
= control target key end

     0   :  { %10 = vsyncpa [#allocation3], 0  ;;  %s2846_s0 = inlined_call_operand.hbm [shape: f32[192,128], index: 0, kind: input, shape index: {}]   ;;  %s2847_s1 = inlined_call_operand.hbm [shape: f32[8,24], index: 1, kind: input, shape index: {}]   ;;  %s2848_s2 = inlined_call_operand.hbm [shape: f32[128,128], index: 2, kind: input, shape index: {}]   ;;  %s2849_s3 = inlined_call_operand.vmem [shape: f32[1,128], index: 3, kind: input, shape index: {}]   ;;  %s2850_s4 = inlined_call_operand.hbm [shape: f32[24,128], index: 4, kind: input, shape index: {}]   ;;  %s2851_s5 = inlined_call_operand.vmem [shape: f32[8,1], index: 5, kind: output, shape index: {}]  }
   0x1   :  { %11 = vsyncpa [#allocation5], 0 }
   0x2   :  { %12 = vsyncpa [#allocation8], 0  ;;  %s2411_s18 = smov [#allocation4]   ;;  %s2412_s20 = smov [#allocation2]  }
   0x3   :  { %s31_s19 = sshll.u32 %s2411_s18, 4  ;;  %s18_s21 = sshll.u32 %s2412_s20, 4  ;;  %s32_s19 = int_to_ptr.vmem [resolvable:$true] %s31_s19  ;;  %s2451_s21 = int_to_ptr.vmem [resolvable:$true] %s18_s21 }
   0x4   :  { %s2317_s24 = scalar_lea.hbm %s2847_s1, 128 }
   0x5   :  { %p2318_p0 = scmp.ne.s32.totalorder %s2847_s1, %s2317_s24  ;;  %p2321_p1 = scmp.lt.u32.totalorder %s2317_s24, %s2847_s1 }
   0x7   :  { %p2323_p2 = pnand %p2321_p1, %p2318_p0 }
   0x9   :  { %2326 = shalt.err (!%p2323_p2)
}
   0xa   :  { %s2327_s29 = scalar_lea.vmem %s32_s19, 128  ;;  %p2332_p4 = scmp.lt.s32.totalorder %s32_s19, %s32_s19 }
   0xb   :  { %p2328_p3 = scmp.ne.s32.totalorder %s32_s19, %s2327_s29  ;;  %p2333_p5 = scmp.lt.s32.totalorder %s2327_s29, %s2327_s29 }
   0xd   :  { %p2334_p6 = por %p2333_p5, %p2332_p4 }
   0xf   :  { %p2335_p7 = pnand %p2334_p6, %p2328_p3 }
  0x11   :  { %2338 = shalt.err (!%p2335_p7)
}
  0x12   :  { %34 = dma.hbm_to_vmem [thread:$0]  %s2847_s1, 128, %s32_s19, [#allocation5]  }
  0x13   :  { %s2339_s9 = scalar_lea.hbm %s2846_s0, 3072 }
  0x14   :  { %p2340_p8 = scmp.ne.s32.totalorder %s2846_s0, %s2339_s9  ;;  %p2343_p9 = scmp.lt.u32.totalorder %s2339_s9, %s2846_s0 }
  0x16   :  { %p2345_p10 = pnand %p2343_p9, %p2340_p8 }
  0x18   :  { %2348 = shalt.err (!%p2345_p10)
}
  0x19   :  { %s2349_s14 = scalar_lea.vmem %s2451_s21, 3072  ;;  %p2354_p12 = scmp.lt.s32.totalorder %s2451_s21, %s2451_s21 }
  0x1a   :  { %p2350_p11 = scmp.ne.s32.totalorder %s2451_s21, %s2349_s14  ;;  %p2355_p13 = scmp.lt.s32.totalorder %s2349_s14, %s2349_s14 }
  0x1c   :  { %p2356_p0 = por %p2355_p13, %p2354_p12 }
  0x1e   :  { %p2357_p1 = pnand %p2356_p0, %p2350_p11 }
  0x20   :  { %2360 = shalt.err (!%p2357_p1)
}
  0x21   :  { %s2413_s1 = smov 128   ;;  %s2414_s15 = smov 8  }
  0x22   :  { %24 = dma.hbm_to_vmem [thread:$0]  %s2846_s0, 3072, %s2451_s21, [#allocation3], %s2413_s1, %s2413_s1, %s2414_s15  }
  0x23   :  { %s2415_s18 = smov [#allocation6]   ;;  %s2416_s20 = smov [#allocation7]  }
  0x24   :  { %s40_s19 = sshll.u32 %s2415_s18, 4  ;;  %s54_s22 = sshll.u32 %s2416_s20, 4  ;;  %s41_s19 = int_to_ptr.vmem [resolvable:$true] %s40_s19  ;;  %s2485_s22 = int_to_ptr.vmem [resolvable:$true] %s54_s22 }
  0x25   :  { %s2361_s25 = scalar_lea.hbm %s2848_s2, 2048 }
  0x26   :  { %p2362_p2 = scmp.ne.s32.totalorder %s2848_s2, %s2361_s25  ;;  %p2365_p3 = scmp.lt.u32.totalorder %s2361_s25, %s2848_s2 }
  0x28   :  { %p2367_p4 = pnand %p2365_p3, %p2362_p2 }
  0x2a   :  { %2370 = shalt.err (!%p2367_p4)
}
  0x2b   :  { %s2371_s0 = scalar_lea.vmem %s41_s19, 2048  ;;  %p2376_p6 = scmp.lt.s32.totalorder %s41_s19, %s41_s19 }
  0x2c   :  { %p2372_p5 = scmp.ne.s32.totalorder %s41_s19, %s2371_s0  ;;  %p2377_p7 = scmp.lt.s32.totalorder %s2371_s0, %s2371_s0 }
  0x2e   :  { %p2378_p8 = por %p2377_p7, %p2376_p6 }
  0x30   :  { %p2379_p9 = pnand %p2378_p8, %p2372_p5 }
  0x32   :  { %2382 = shalt.err (!%p2379_p9)
}
  0x33   :  { %46 = dma.hbm_to_vmem [thread:$0]  %s2848_s2, 2048, %s41_s19, [#allocation5], %s2413_s1, %s2413_s1, %s2414_s15  }
  0x34   :  { %s2383_s8 = scalar_lea.hbm %s2850_s4, 384 }
  0x35   :  { %p2384_p10 = scmp.ne.s32.totalorder %s2850_s4, %s2383_s8  ;;  %p2387_p11 = scmp.lt.u32.totalorder %s2383_s8, %s2850_s4 }
  0x37   :  { %p2389_p12 = pnand %p2387_p11, %p2384_p10 }
  0x39   :  { %2392 = shalt.err (!%p2389_p12)
}
  0x3a   :  { %s2393_s13 = scalar_lea.vmem %s2485_s22, 384  ;;  %p2398_p0 = scmp.lt.s32.totalorder %s2485_s22, %s2485_s22 }
  0x3b   :  { %p2394_p13 = scmp.ne.s32.totalorder %s2485_s22, %s2393_s13  ;;  %p2399_p1 = scmp.lt.s32.totalorder %s2393_s13, %s2393_s13 }
  0x3d   :  { %p2400_p2 = por %p2399_p1, %p2398_p0 }
  0x3f   :  { %p2401_p3 = pnand %p2400_p2, %p2394_p13 }
  0x41   :  { %2404 = shalt.err (!%p2401_p3)
}
  0x42   :  { %60 = dma.hbm_to_vmem [thread:$0]  %s2850_s4, 384, %s2485_s22, [#allocation8], %s2413_s1, %s2413_s1, %s2414_s15  }
  0x43   :  { %2405 = dma.done.wait [#allocation3], 3072  }
  0x44   :  { %2406 = vsyncadd [#allocation3], 4294964224 }
  0x45   :  { %2407 = dma.done.wait [#allocation5], 2176  }
  0x46   :  { %2408 = vsyncadd [#allocation5], 4294965120 }
  0x47   :  { %2409 = dma.done.wait [#allocation8], 384  }
  0x48   :  { %2410 = vsyncadd [#allocation8], 4294966912  ;;  %v97_v0 = vld [vmem:[#allocation6] sm:$0xff]  ;;  %v98_v1 = vld [vmem:[#allocation6 + $0x8] sm:$0xff]  ;;  %v2417_v48 = vmov 0.0|0.0   ;;  %vm443_vm0 = vcmask 130112  }
  0x49   :  { %v99_v2 = vld [vmem:[#allocation6 + $0x10] sm:$0xff]  ;;  %v2219_v3 = vpack.c.bf16 %v98_v1, %v97_v0  ;;  %v100_v4 = vld [vmem:[#allocation6 + $0x18] sm:$0xff]  ;;  %v101_v6 = vld [vmem:[#allocation6 + $0x20] sm:$0xff]  ;;  %2251 = vmatprep.subr.bf16.mxu1 %v2417_v48  ;;  %vm450_vm1 = vcmask 195712   ;;  %vm550_vm2 = vcmask 1041409   ;;  %vm552_vm3 = vcmask 1042434  }
  0x4a   :  { %v2223_v5 = vpack.c.bf16 %v100_v4, %v99_v2  ;;  %v102_v7 = vld [vmem:[#allocation6 + $0x28] sm:$0xff]  ;;  %v73_v9 = vld [vmem:[#allocation2] sm:$0xff]  ;;  %v103_v10 = vld [vmem:[#allocation6 + $0x30] sm:$0xff]  ;;  %vm554_vm4 = vcmask 1043459   ;;  %vm556_vm5 = vcmask 1044484   ;;  %vm558_vm8 = vcmask 1045509  }
  0x4b   :  { %2220 = vmatprep.subr.bf16.mxu0 %v2219_v3  ;;  %v2227_v8 = vpack.c.bf16 %v102_v7, %v101_v6  ;;  %v104_v11 = vld [vmem:[#allocation6 + $0x38] sm:$0xff]  ;;  %2039 = vmatprep.mubr.f32.mxu0 %v73_v9  ;;  %v105_v13 = vld [vmem:[#allocation6 + $0x40] sm:$0xff]  ;;  %v106_v14 = vld [vmem:[#allocation6 + $0x48] sm:$0xff]  ;;  %v2418_v6 = vmov 0.0   ;;  %vm560_vm10 = vcmask 1046534   ;;  %vm562_vm11 = vcmask 1047559  }
  0x4c   :  { %2222 = vmatpush3.bf16.msra.mxu0 %v2219_v3  ;;  %v2231_v12 = vpack.c.bf16 %v104_v11, %v103_v10  ;;  %v2235_v15 = vpack.c.bf16 %v106_v14, %v105_v13  ;;  %v107_v16 = vld [vmem:[#allocation6 + $0x50] sm:$0xff]  ;;  %v108_v17 = vld [vmem:[#allocation6 + $0x58] sm:$0xff]  ;;  %v109_v19 = vld [vmem:[#allocation6 + $0x60] sm:$0xff]  ;;  %vm569_vm14 = vcmask 195584   ;;  %vm2419_vm15 = vmmov 0  }
  0x4d   :  { %2224 = vmatprep.subr.bf16.mxu0 %v2223_v5  ;;  %v2239_v18 = vpack.c.bf16 %v108_v17, %v107_v16  ;;  %v110_v20 = vld [vmem:[#allocation6 + $0x68] sm:$0xff]  ;;  %v111_v22 = vld [vmem:[#allocation6 + $0x70] sm:$0xff]  ;;  %v112_v23 = vld [vmem:[#allocation6 + $0x78] sm:$0xff]  ;;  %2081 = vmatprep.mubr.msk.f32.mxu1 %vm2419_vm15, %v2418_v6 }
  0x4e   :  { %v2243_v21 = vpack.c.bf16 %v110_v20, %v109_v19  ;;  %v2247_v24 = vpack.c.bf16 %v112_v23, %v111_v22  ;;  %v74_v25 = vld [vmem:[#allocation2 + $0x8] sm:$0xff]  ;;  %v75_v26 = vld [vmem:[#allocation2 + $0x10] sm:$0xff]  ;;  %v76_v27 = vld [vmem:[#allocation2 + $0x18] sm:$0xff] }
  0x4f   :  { %v77_v28 = vld [vmem:[#allocation2 + $0x20] sm:$0xff]  ;;  %v78_v29 = vld [vmem:[#allocation2 + $0x28] sm:$0xff]  ;;  %v79_v30 = vld [vmem:[#allocation2 + $0x30] sm:$0xff] }
  0x50   :  { %2226 = vmatpush3.bf16.msra.mxu0 %v2223_v5  ;;  %v80_v31 = vld [vmem:[#allocation2 + $0x38] sm:$0xff]  ;;  %v81_v32 = vld [vmem:[#allocation2 + $0x40] sm:$0xff]  ;;  %v82_v33 = vld [vmem:[#allocation2 + $0x48] sm:$0xff] }
  0x51   :  { %2228 = vmatprep.subr.bf16.mxu0 %v2227_v8  ;;  %v83_v34 = vld [vmem:[#allocation2 + $0x50] sm:$0xff]  ;;  %v84_v35 = vld [vmem:[#allocation2 + $0x58] sm:$0xff]  ;;  %v85_v36 = vld [vmem:[#allocation2 + $0x60] sm:$0xff] }
  0x52   :  { %v86_v37 = vld [vmem:[#allocation2 + $0x68] sm:$0xff]  ;;  %v87_v38 = vld [vmem:[#allocation2 + $0x70] sm:$0xff]  ;;  %v88_v39 = vld [vmem:[#allocation2 + $0x78] sm:$0xff] }
  0x53   :  { %v89_v40 = vld [vmem:[#allocation2 + $0x80] sm:$0xff]  ;;  %v90_v41 = vld [vmem:[#allocation2 + $0x88] sm:$0xff]  ;;  %v91_v42 = vld [vmem:[#allocation2 + $0x90] sm:$0xff] }
  0x54   :  { %2230 = vmatpush3.bf16.msra.mxu0 %v2227_v8  ;;  %v92_v43 = vld [vmem:[#allocation2 + $0x98] sm:$0xff]  ;;  %v93_v44 = vld [vmem:[#allocation2 + $0xa0] sm:$0xff]  ;;  %v94_v45 = vld [vmem:[#allocation2 + $0xa8] sm:$0xff] }
  0x55   :  { %2232 = vmatprep.subr.bf16.mxu0 %v2231_v12  ;;  %v95_v46 = vld [vmem:[#allocation2 + $0xb0] sm:$0xff]  ;;  %v96_v47 = vld [vmem:[#allocation2 + $0xb8] sm:$0xff]  ;;  %v2527_v49 = vld [vmem:[%s2849_s3] ss:$0 sm:$0xff] }
  0x56   :  { %v2531_v54 = vld [vmem:[#allocation7 + $0x8] sm:$0xff]  ;;  %v2538_v63 = vld [vmem:[#allocation7] sm:$0xff]  ;;  %v2548_v9 = vld [vmem:[#allocation7 + $0x10] sm:$0xff] }
  0x58   :  { %2234 = vmatpush3.bf16.msra.mxu0 %v2231_v12 }
  0x59   :  { %2236 = vmatprep.subr.bf16.mxu0 %v2235_v15 }
  0x5c   :  { %2238 = vmatpush3.bf16.msra.mxu0 %v2235_v15 }
  0x5d   :  { %2240 = vmatprep.subr.bf16.mxu0 %v2239_v18 }
  0x60   :  { %2242 = vmatpush3.bf16.msra.mxu0 %v2239_v18 }
  0x61   :  { %2244 = vmatprep.subr.bf16.mxu0 %v2243_v21 }
  0x64   :  { %2246 = vmatpush3.bf16.msra.mxu0 %v2243_v21 }
  0x65   :  { %2248 = vmatprep.subr.bf16.mxu0 %v2247_v24 }
  0x68   :  { %2250 = vmatpush3.bf16.msra.mxu0 %v2247_v24 }
  0x69   :  { %2290 = vmatprep.subr.bf16.mxu0 %v2417_v48 }
  0x6b   :  { %2040 = vmatmul.mubr.f32.vlgmr.msra.gmra.mrb[0].mxu0 %v74_v25 }
  0x6c   :  { %2042 = vmatprep.mubr.f32.mxu0 %v75_v26 }
  0x6f   :  { %2043 = vmatmul.mubr.f32.gmra.mrb[2].mxu0 %v76_v27 }
  0x70   :  { %2045 = vmatprep.mubr.f32.mxu0 %v77_v28 }
  0x73   :  { %2046 = vmatmul.mubr.f32.gmra.mrb[4].mxu0 %v78_v29 }
  0x74   :  { %2048 = vmatprep.mubr.f32.mxu0 %v79_v30 }
  0x77   :  { %2049 = vmatmul.mubr.f32.gmra.mrb[6].mxu0 %v80_v31 }
  0x78   :  { %2051 = vmatprep.mubr.f32.mxu0 %v81_v32 }
  0x7b   :  { %2052 = vmatmul.mubr.f32.gmra.mrb[8].mxu0 %v82_v33 }
  0x7c   :  { %2054 = vmatprep.mubr.f32.mxu0 %v83_v34 }
  0x7f   :  { %2055 = vmatmul.mubr.f32.gmra.mrb[10].mxu0 %v84_v35 }
  0x80   :  { %2057 = vmatprep.mubr.f32.mxu0 %v85_v36 }
  0x83   :  { %2058 = vmatmul.mubr.f32.gmra.mrb[12].mxu0 %v86_v37 }
  0x84   :  { %2060 = vmatprep.mubr.f32.mxu0 %v87_v38 }
  0x87   :  { %2061 = vmatmul.mubr.f32.gmra.mrb[14].mxu0 %v88_v39 }
  0x88   :  { %2063 = vmatprep.mubr.f32.mxu0 %v89_v40 }
  0x8b   :  { %2064 = vmatmul.mubr.f32.gmra.mrb[16].mxu0 %v90_v41 }
  0x8c   :  { %2066 = vmatprep.mubr.f32.mxu0 %v91_v42 }
  0x8f   :  { %2067 = vmatmul.mubr.f32.gmra.mrb[18].mxu0 %v92_v43 }
  0x90   :  { %2069 = vmatprep.mubr.f32.mxu0 %v93_v44 }
  0x93   :  { %2070 = vmatmul.mubr.f32.gmra.mrb[20].mxu0 %v94_v45 }
  0x94   :  { %2072 = vmatprep.mubr.f32.mxu0 %v95_v46 }
  0x97   :  { %2073 = vmatmul.mubr.f32.gmra.mrb[22].mxu0 %v96_v47 }
  0x98   :  { %2198 = vmatprep.mubr.msk.f32.mxu0 %vm2419_vm15, %v2418_v6 }
 0x13e   :  { %v2041_v50 = vpop.f32.mrb[0].mxu0 }
 0x13f   :  { %v192_v51 = vadd.f32 %v2041_v50, %v2527_v49  ;;  %v186_v52 = vpop.f32.mrb[1].mxu0 }
 0x140   :  { %v187_v53 = vadd.f32 %v2527_v49, %v186_v52 }
 0x141   :  { %v306_v55 = vmax.f32 %v192_v51, 0.0 }
 0x142   :  { %v305_v56 = vmax.f32 %v187_v53, 0.0  ;;  %v2044_v57 = vpop.f32.mrb[2].mxu0 }
 0x143   :  { %v202_v58 = vadd.f32 %v2044_v57, %v2527_v49  ;;  %v196_v59 = vpop.f32.mrb[3].mxu0  ;;  %v333_v60 = vmul.f32 %v2531_v54, %v306_v55 }
 0x144   :  { %v197_v61 = vadd.f32 %v2527_v49, %v196_v59  ;;  %v2536_v62 = vpack.c.bf16 %v306_v55, %v305_v56  ;;  %v332_v7 = vmul.f32 %v2538_v63, %v305_v56 }
 0x145   :  { %v308_v0 = vmax.f32 %v202_v58, 0.0  ;;  %358 = vadd.xlane.f32.xlu0 %v333_v60 }
 0x146   :  { %v2047_v1 = vpop.f32.mrb[4].mxu0  ;;  %2253 = vmatpush3.bf16.msra.mxu1 %v2536_v62  ;;  %v2541_v2 = vmax.f32 %v197_v61, 0.0 }
 0x147   :  { %v212_v3 = vadd.f32 %v2047_v1, %v2527_v49  ;;  %v206_v4 = vpop.f32.mrb[5].mxu0  ;;  %v335_v5 = vmul.f32 %v2538_v63, %v308_v0  ;;  %2079 = vmatprep.subr.mxu1 %v2418_v6 }
 0x148   :  { %v207_v8 = vadd.f32 %v2527_v49, %v206_v4  ;;  %v334_v16 = vmul.f32 %v2548_v9, %v2541_v2 }
 0x149   :  { %v2550_v10 = vmax.f32 %v212_v3, 0.0  ;;  %362 = vadd.xlane.f32.xlu1 %v335_v5  ;;  %356 = vadd.xlane.f32.xlu0 %v332_v7 }
 0x14a   :  { %v309_v11 = vmax.f32 %v207_v8, 0.0  ;;  %v2050_v12 = vpop.f32.mrb[6].mxu0  ;;  %2080 = vmatpush3.msra.mxu1 %v2541_v2 }
 0x14b   :  { %v222_v13 = vadd.f32 %v2050_v12, %v2527_v49  ;;  %v216_v14 = vpop.f32.mrb[7].mxu0  ;;  %v337_v15 = vmul.f32 %v2548_v9, %v2550_v10  ;;  %2254 = vmatprep.subr.bf16.mxu1 %v2417_v48 }
 0x14c   :  { %v2559_v17 = vpack.c.bf16 %v309_v11, %v308_v0  ;;  %v217_v18 = vadd.f32 %v2527_v49, %v216_v14  ;;  %v336_v24 = vmul.f32 %v2531_v54, %v309_v11 }
 0x14d   :  { %v312_v19 = vmax.f32 %v222_v13, 0.0  ;;  %366 = vadd.xlane.f32.xlu1 %v337_v15  ;;  %360 = vadd.xlane.f32.xlu0 %v334_v16 }
 0x14e   :  { %v311_v20 = vmax.f32 %v217_v18, 0.0  ;;  %v2053_v21 = vpop.f32.mrb[8].mxu0 }
 0x14f   :  { %v232_v22 = vadd.f32 %v2053_v21, %v2527_v49  ;;  %v226_v23 = vpop.f32.mrb[9].mxu0  ;;  %v339_v33 = vmul.f32 %v2531_v54, %v312_v19 }
 0x150   :  { %v2564_v25 = vpack.c.bf16 %v312_v19, %v311_v20  ;;  %v227_v26 = vadd.f32 %v2527_v49, %v226_v23  ;;  %v338_v27 = vmul.f32 %v2538_v63, %v311_v20 }
 0x151   :  { %364 = vadd.xlane.f32.xlu1 %v336_v24  ;;  %v314_v30 = vmax.f32 %v232_v22, 0.0 }
 0x152   :  { %v2568_v28 = vmax.f32 %v227_v26, 0.0  ;;  %v2056_v29 = vpop.f32.mrb[10].mxu0  ;;  %368 = vadd.xlane.f32.xlu0 %v338_v27 }
 0x153   :  { %v242_v31 = vadd.f32 %v2056_v29, %v2527_v49  ;;  %v236_v32 = vpop.f32.mrb[11].mxu0  ;;  %v341_v41 = vmul.f32 %v2538_v63, %v314_v30 }
 0x154   :  { %v237_v34 = vadd.f32 %v2527_v49, %v236_v32  ;;  %v340_v35 = vmul.f32 %v2548_v9, %v2568_v28 }
 0x155   :  { %370 = vadd.xlane.f32.xlu1 %v339_v33  ;;  %v2575_v38 = vmax.f32 %v242_v31, 0.0 }
 0x156   :  { %v315_v36 = vmax.f32 %v237_v34, 0.0  ;;  %v2059_v37 = vpop.f32.mrb[12].mxu0  ;;  %372 = vadd.xlane.f32.xlu0 %v340_v35 }
 0x157   :  { %v252_v39 = vadd.f32 %v2059_v37, %v2527_v49  ;;  %v246_v40 = vpop.f32.mrb[13].mxu0  ;;  %v343_v52 = vmul.f32 %v2548_v9, %v2575_v38 }
 0x158   :  { %v2579_v42 = vpack.c.bf16 %v315_v36, %v314_v30  ;;  %v247_v43 = vadd.f32 %v2527_v49, %v246_v40  ;;  %v342_v44 = vmul.f32 %v2531_v54, %v315_v36 }
 0x159   :  { %v318_v45 = vmax.f32 %v252_v39, 0.0  ;;  %374 = vadd.xlane.f32.xlu1 %v341_v41 }
 0x15a   :  { %v317_v46 = vmax.f32 %v247_v43, 0.0  ;;  %v2062_v47 = vpop.f32.mrb[14].mxu0  ;;  %376 = vadd.xlane.f32.xlu0 %v342_v44 }
 0x15b   :  { %v262_v50 = vadd.f32 %v2062_v47, %v2527_v49  ;;  %v256_v51 = vpop.f32.mrb[15].mxu0  ;;  %v345_v0 = vmul.f32 %v2531_v54, %v318_v45 }
 0x15c   :  { %v2586_v53 = vpack.c.bf16 %v318_v45, %v317_v46  ;;  %v257_v55 = vadd.f32 %v2527_v49, %v256_v51  ;;  %v344_v56 = vmul.f32 %v2538_v63, %v317_v46 }
 0x15d   :  { %378 = vadd.xlane.f32.xlu1 %v343_v52  ;;  %v320_v59 = vmax.f32 %v262_v50, 0.0 }
 0x15e   :  { %v2590_v57 = vmax.f32 %v257_v55, 0.0  ;;  %v2065_v58 = vpop.f32.mrb[16].mxu0  ;;  %380 = vadd.xlane.f32.xlu0 %v344_v56  ;;  %v404_v56 = vlaneseq }
 0x15f   :  { %v272_v60 = vadd.f32 %v2065_v58, %v2527_v49  ;;  %v266_v61 = vpop.f32.mrb[17].mxu0  ;;  %v347_v12 = vmul.f32 %v2538_v63, %v320_v59 }
 0x160   :  { %v267_v1 = vadd.f32 %v2527_v49, %v266_v61  ;;  %v346_v3 = vmul.f32 %v2548_v9, %v2590_v57 }
 0x161   :  { %382 = vadd.xlane.f32.xlu1 %v345_v0  ;;  %v2597_v7 = vmax.f32 %v272_v60, 0.0  ;;  %v2633_v0 = vshrl.u32 %v404_v56, 7 }
 0x162   :  { %v321_v4 = vmax.f32 %v267_v1, 0.0  ;;  %v2068_v5 = vpop.f32.mrb[18].mxu0  ;;  %384 = vadd.xlane.f32.xlu0 %v346_v3 }
 0x163   :  { %v282_v8 = vadd.f32 %v2068_v5, %v2527_v49  ;;  %v276_v11 = vpop.f32.mrb[19].mxu0  ;;  %v349_v22 = vmul.f32 %v2548_v9, %v2597_v7 }
 0x164   :  { %v2601_v13 = vpack.c.bf16 %v321_v4, %v320_v59  ;;  %v277_v14 = vadd.f32 %v2527_v49, %v276_v11  ;;  %v348_v15 = vmul.f32 %v2531_v54, %v321_v4 }
 0x165   :  { %v324_v16 = vmax.f32 %v282_v8, 0.0  ;;  %386 = vadd.xlane.f32.xlu1 %v347_v12 }
 0x166   :  { %v323_v18 = vmax.f32 %v277_v14, 0.0  ;;  %v2071_v19 = vpop.f32.mrb[20].mxu0  ;;  %2292 = vmatpush3.bf16.msra.mxu0 %v2601_v13  ;;  %388 = vadd.xlane.f32.xlu0 %v348_v15  ;;  %v2648_v15 = vld [vmem:[#allocation4] sm:$0xff] }
 0x167   :  { %v292_v20 = vadd.f32 %v2071_v19, %v2527_v49  ;;  %v286_v21 = vpop.f32.mrb[21].mxu0  ;;  %2196 = vmatprep.subr.mxu0 %v2418_v6  ;;  %v351_v33 = vmul.f32 %v2531_v54, %v324_v16  ;;  %vm407_vm6 = vcmp.le.f32.partialorder %v2648_v15, 0.0 }
 0x168   :  { %v2610_v23 = vpack.c.bf16 %v324_v16, %v323_v18  ;;  %v287_v24 = vadd.f32 %v2527_v49, %v286_v21  ;;  %v350_v26 = vmul.f32 %v2538_v63, %v323_v18 }
 0x169   :  { %390 = vadd.xlane.f32.xlu1 %v349_v22  ;;  %v326_v30 = vmax.f32 %v292_v20, 0.0 }
 0x16a   :  { %v2614_v27 = vmax.f32 %v287_v24, 0.0  ;;  %v2074_v29 = vpop.f32.mrb[22].mxu0  ;;  %2197 = vmatpush3.msra.mxu0 %v2597_v7  ;;  %392 = vadd.xlane.f32.xlu0 %v350_v26 }
 0x16b   :  { %v302_v31 = vadd.f32 %v2074_v29, %v2527_v49  ;;  %v296_v32 = vpop.f32.mrb[23].mxu0  ;;  %2296 = vmatprep.subr.bf16.mxu0 %v2417_v48  ;;  %v353_v39 = vmul.f32 %v2538_v63, %v326_v30 }
 0x16c   :  { %v297_v34 = vadd.f32 %v2527_v49, %v296_v32  ;;  %v352_v35 = vmul.f32 %v2548_v9, %v2614_v27 }
 0x16d   :  { %394 = vadd.xlane.f32.xlu1 %v351_v33  ;;  %v2623_v37 = vmax.f32 %v302_v31, 0.0 }
 0x16e   :  { %v327_v36 = vmax.f32 %v297_v34, 0.0  ;;  %396 = vadd.xlane.f32.xlu0 %v352_v35 }
 0x16f   :  { %v355_v43 = vmul.f32 %v2548_v9, %v2623_v37 }
 0x170   :  { %v2626_v40 = vpack.c.bf16 %v327_v36, %v326_v30  ;;  %v354_v41 = vmul.f32 %v2531_v54, %v327_v36  ;;  %v2631_v54 = vand.u32 127, %v404_v56 }
 0x171   :  { %398 = vadd.xlane.f32.xlu1 %v353_v39 }
 0x172   :  { %400 = vadd.xlane.f32.xlu0 %v354_v41  ;;  %v438_v9 = vadd.s32 4294967288, %v2631_v54  ;;  %v445_v3 = vadd.s32 4294967280, %v2631_v54  ;;  %v2642_v8 = vsub.s32 %v2631_v54, %v2633_v0  ;;  %vm566_vm7 = vcmp.ge.s32.totalorder %v2631_v54, 8 }
 0x173   :  { %vm408_vm9 = vcmp.lt.s32.totalorder %v2631_v54, 8  ;;  %vm567_vm12 = vmand %vm566_vm7, %vm407_vm6 }
 0x174   :  { %v2638_v5 = vsub.s32 %v438_v9, %v2633_v0  ;;  %v2645_v12 = vsub.s32 %v445_v3, %v2633_v0  ;;  %vm409_vm13 = vmand %vm408_vm9, %vm407_vm6 }
 0x175   :  { %402 = vadd.xlane.f32.xlu1 %v355_v43 }
 0x1d2   :  { %v359_v49 = vpop.xlane.xlu0 %358 }
 0x1d3   :  { %v442_v21 = vrot.slane %v359_v49, %v2638_v5 }
 0x1d6   :  { %v363_v44 = vpop.xlane.xlu1 %362  ;;  %v357_v45 = vpop.xlane.xlu0 %356 }
 0x1d7   :  { %v455_v18 = vrot.slane %v363_v44, %v2642_v8  ;;  %v437_v22 = vrot.slane %v357_v45, %v2642_v8 }
 0x1da   :  { %v367_v46 = vpop.xlane.xlu1 %366  ;;  %v361_v47 = vpop.xlane.xlu0 %360 }
 0x1db   :  { %v464_v24 = vrot.slane %v367_v46, %v2645_v12  ;;  %v449_v31 = vrot.slane %v361_v47, %v2645_v12 }
 0x1de   :  { %v365_v50 = vpop.xlane.xlu1 %364 }
 0x1df   :  { %v369_v51 = vpop.xlane.xlu0 %368  ;;  %v459_v14 = vrot.slane %v365_v50, %v2638_v5  ;;  %v444_v50 = vsel %vm443_vm0, %v442_v21, %v437_v22 }
 0x1e0   :  { %v469_v29 = vrot.slane %v369_v51, %v2642_v8 }
 0x1e1   :  { %v460_v26 = vsel %vm443_vm0, %v459_v14, %v455_v18 }
 0x1e2   :  { %v371_v52 = vpop.xlane.xlu1 %370  ;;  %v465_v44 = vsel %vm450_vm1, %v464_v24, %v460_v26 }
 0x1e3   :  { %v373_v55 = vpop.xlane.xlu0 %372  ;;  %v473_v19 = vrot.slane %v371_v52, %v2638_v5 }
 0x1e4   :  { %v478_v32 = vrot.slane %v373_v55, %v2645_v12 }
 0x1e5   :  { %v474_v36 = vsel %vm443_vm0, %v473_v19, %v469_v29 }
 0x1e6   :  { %v375_v63 = vpop.xlane.xlu1 %374  ;;  %v479_v56 = vsel %vm450_vm1, %v478_v32, %v474_v36 }
 0x1e7   :  { %v377_v58 = vpop.xlane.xlu0 %376  ;;  %v483_v33 = vrot.slane %v375_v63, %v2642_v8  ;;  %v451_v63 = vsel %vm450_vm1, %v449_v31, %v444_v50  ;;  %v2420_v50 = vmov 1966171168  }
 0x1e8   :  { %v487_v34 = vrot.slane %v377_v58, %v2638_v5 }
 0x1ea   :  { %v379_v59 = vpop.xlane.xlu1 %378  ;;  %v488_v58 = vsel %vm443_vm0, %v487_v34, %v483_v33 }
 0x1eb   :  { %v381_v60 = vpop.xlane.xlu0 %380  ;;  %v492_v39 = vrot.slane %v379_v59, %v2645_v12 }
 0x1ec   :  { %v497_v41 = vrot.slane %v381_v60, %v2642_v8 }
 0x1ed   :  { %v493_v9 = vsel %vm450_vm1, %v492_v39, %v488_v58 }
 0x1ee   :  { %v383_v61 = vpop.xlane.xlu1 %382 }
 0x1ef   :  { %v385_v1 = vpop.xlane.xlu0 %384  ;;  %v501_v30 = vrot.slane %v383_v61, %v2638_v5  ;;  %v551_v61 = vsel %vm550_vm2, %v465_v44, %v451_v63 }
 0x1f0   :  { %v506_v45 = vrot.slane %v385_v1, %v2645_v12  ;;  %v553_v18 = vsel %vm552_vm3, %v479_v56, %v551_v61 }
 0x1f1   :  { %v502_v51 = vsel %vm443_vm0, %v501_v30, %v497_v41 }
 0x1f2   :  { %v387_v4 = vpop.xlane.xlu1 %386 }
 0x1f3   :  { %v389_v11 = vpop.xlane.xlu0 %388  ;;  %v511_v46 = vrot.slane %v387_v4, %v2642_v8  ;;  %v507_v4 = vsel %vm450_vm1, %v506_v45, %v502_v51  ;;  %v584_v51 = vunpack.c.l.s4 %v2420_v50 }
 0x1f4   :  { %v515_v47 = vrot.slane %v389_v11, %v2638_v5 }
 0x1f6   :  { %v391_v16 = vpop.xlane.xlu1 %390  ;;  %v516_v11 = vsel %vm443_vm0, %v515_v47, %v511_v46 }
 0x1f7   :  { %v393_v20 = vpop.xlane.xlu0 %392  ;;  %v520_v52 = vrot.slane %v391_v16, %v2645_v12 }
 0x1f8   :  { %v525_v55 = vrot.slane %v393_v20, %v2642_v8  ;;  %v555_v20 = vsel %vm554_vm4, %v493_v9, %v553_v18 }
 0x1f9   :  { %v521_v19 = vsel %vm450_vm1, %v520_v52, %v516_v11  ;;  %v557_v24 = vsel %vm556_vm5, %v507_v4, %v555_v20  ;;  %v585_v52 = vunpack.c.0.s8 %v584_v51 }
 0x1fa   :  { %v395_v35 = vpop.xlane.xlu1 %394 }
 0x1fb   :  { %v529_v43 = vrot.slane %v395_v35, %v2638_v5  ;;  %v397_v49 = vpop.xlane.xlu0 %396  ;;  %v2714_v63 = vsub.s32 %v585_v52, %v2633_v0 }
 0x1fc   :  { %v534_v59 = vrot.slane %v397_v49, %v2645_v12 }
 0x1fd   :  { %v530_v1 = vsel %vm443_vm0, %v529_v43, %v525_v55 }
 0x1fe   :  { %v399_v60 = vpop.xlane.xlu1 %398  ;;  %v535_v21 = vsel %vm450_vm1, %v534_v59, %v530_v1 }
 0x1ff   :  { %v401_v3 = vpop.xlane.xlu0 %400  ;;  %v539_v14 = vrot.slane %v399_v60, %v2642_v8  ;;  %v559_v8 = vsel %vm558_vm8, %v521_v19, %v557_v24 }
 0x200   :  { %v543_v16 = vrot.slane %v401_v3, %v2638_v5  ;;  %v561_v30 = vsel %vm560_vm10, %v535_v21, %v559_v8 }
 0x202   :  { %v403_v22 = vpop.xlane.xlu1 %402  ;;  %v544_v5 = vsel %vm443_vm0, %v543_v16, %v539_v14  ;;  %vm1877_vm0 = vcmask 7168  }
 0x203   :  { %v548_v26 = vrot.slane %v403_v22, %v2645_v12 }
 0x205   :  { %v549_v29 = vsel %vm450_vm1, %v548_v26, %v544_v5 }
 0x206   :  { %v563_v12 = vsel %vm562_vm11, %v549_v29, %v561_v30 }
 0x207   :  { %v568_v31 = vsel %vm567_vm12, %v563_v12, -1e+30  ;;  %v565_v32 = vsel %vm409_vm13, %v563_v12, -1e+30 }
 0x208   :  { %v631_v33 = vsel %vm569_vm14, %v568_v31, -inf  ;;  %v570_v54 = vsel %vm569_vm14, %v565_v32, -inf }
 0x209   :  { %632 = vmax.xlane.f32.xlu1 %v631_v33  ;;  %571 = vmax.xlane.f32.xlu0 %v570_v54 }
 0x296   :  { %v633_v34 = vpop.xlane.xlu1 %632  ;;  %v572_v35 = vpop.xlane.xlu0 %571 }
 0x297   :  { %v634_v36 = vsub.f32 %v568_v31, %v633_v34  ;;  %v573_v15 = vsub.f32 %v565_v32, %v572_v35 }
 0x299   :  { %v635_v39 = vmul.f32 1.442695, %v634_v36  ;;  %v574_v41 = vmul.f32 1.442695, %v573_v15 }
 0x29b   :  { %2309 = vpow2.f32 %v635_v39 }
 0x29c   :  { %2311 = vpow2.f32 %v574_v41 }
 0x2a5   :  { %v2310_v43 = vpop.eup %2309 }
 0x2a6   :  { %v2312_v49 = vpop.eup %2311  ;;  %v637_v44 = vsel %vm569_vm14, %v2310_v43, 0.0 }
 0x2a7   :  { %638 = vadd.xlane.f32.xlu1 %v637_v44  ;;  %v576_v45 = vsel %vm569_vm14, %v2312_v49, 0.0 }
 0x2a8   :  { %577 = vadd.xlane.f32.xlu0 %v576_v45 }
 0x334   :  { %v639_v46 = vpop.xlane.xlu1 %638 }
 0x335   :  { %2313 = vrcp.f32 %v639_v46  ;;  %v578_v47 = vpop.xlane.xlu0 %577 }
 0x336   :  { %2315 = vrcp.f32 %v578_v47 }
 0x33f   :  { %v2314_v55 = vpop.eup %2313 }
 0x340   :  { %v2316_v56 = vpop.eup %2315  ;;  %v2716_v58 = vmul.f32 %v2314_v55, %v2310_v43 }
 0x341   :  { %v580_v59 = vmul.f32 %v2316_v56, %v2312_v49 }
 0x342   :  { %v643_v60 = vcombine.high %v2716_v58, %v2716_v58  ;;  %v650_v5 = vrot.slane %v2716_v58, %v2714_v63 }
 0x343   :  { %v589_v61 = vrot.slane %v580_v59, %v2714_v63  ;;  %v582_v19 = vcombine.high %v580_v59, %v580_v59 }
 0x344   :  { %v657_v9 = vrot.slane %v643_v60, %v2714_v63 }
 0x345   :  { %v605_v1 = vrot.slane %v589_v61, %v2714_v63  ;;  %v597_v11 = vcombine.high %v589_v61, %v589_v61  ;;  %v596_v21 = vrot.slane %v582_v19, %v2714_v63 }
 0x346   :  { %v659_v3 = vcombine.high %v657_v9, %v657_v9  ;;  %v2724_v4 = vrot.slane %v657_v9, %v2714_v63 }
 0x347   :  { %2082 = vmatmul.mubr.msk.f32.vlgmr.msra.gmra.mrb[0].mxu1 %vm569_vm14, %v605_v1  ;;  %v619_v14 = vrot.slane %v597_v11, %v2714_v63  ;;  %v627_v18 = vcombine.high %v605_v1, %v605_v1  ;;  %v612_v22 = vrot.slane %v596_v21, %v2714_v63  ;;  %v598_v24 = vcombine.high %v596_v21, %v596_v21 }
 0x348   :  { %2256 = vmatpush3.bf16.msra.mxu1 %v2559_v17  ;;  %2090 = vmatprep.mubr.msk.f32.mxu1 %vm2419_vm15, %v2418_v6  ;;  %v687_v0 = vrot.slane %v659_v3, %v2714_v63 }
 0x349   :  { %2088 = vmatprep.subr.mxu1 %v2418_v6  ;;  %v629_v20 = vcombine.high %v619_v14, %v619_v14  ;;  %v626_v26 = vrot.slane %v598_v24, %v2714_v63 }
 0x34a   :  { %2199 = vmatmul.mubr.msk.f32.vlgmr.msra.gmra.mrb[24].mxu0 %vm569_vm14, %v687_v0  ;;  %v691_v16 = vcombine.high %v687_v0, %v687_v0 }
 0x34b   :  { %2298 = vmatpush3.bf16.msra.mxu0 %v2626_v40  ;;  %2216 = vmatprep.mubr.msk.f32.mxu0 %vm2419_vm15, %v2418_v6 }
 0x34c   :  { %2089 = vmatpush3.msra.mxu1 %v2550_v10  ;;  %2214 = vmatprep.subr.mxu0 %v2418_v6 }
 0x34d   :  { %2091 = vmatmul.mubr.msk.f32.vlgmr.msra.gmra.mrb[2].mxu1 %vm569_vm14, %v619_v14  ;;  %2257 = vmatprep.subr.bf16.mxu1 %v2417_v48 }
 0x34e   :  { %2259 = vmatpush3.bf16.msra.mxu1 %v2564_v25  ;;  %2099 = vmatprep.mubr.msk.f32.mxu1 %vm2419_vm15, %v2418_v6 }
 0x34f   :  { %2215 = vmatpush3.msra.mxu0 %v2623_v37  ;;  %2097 = vmatprep.subr.mxu1 %v2418_v6 }
 0x350   :  { %2217 = vmatmul.mubr.msk.f32.vlgmr.msra.gmra.mrb[26].mxu0 %vm569_vm14, %v691_v16 }
 0x352   :  { %2098 = vmatpush3.msra.mxu1 %v2568_v28 }
 0x353   :  { %2100 = vmatmul.mubr.msk.f32.vlgmr.msra.gmra.mrb[4].mxu1 %vm569_vm14, %v627_v18  ;;  %2260 = vmatprep.subr.bf16.mxu1 %v2417_v48 }
 0x354   :  { %2262 = vmatpush3.bf16.msra.mxu1 %v2579_v42  ;;  %2108 = vmatprep.mubr.msk.f32.mxu1 %vm2419_vm15, %v2418_v6 }
 0x355   :  { %2106 = vmatprep.subr.mxu1 %v2418_v6 }
 0x358   :  { %2107 = vmatpush3.msra.mxu1 %v2575_v38 }
 0x359   :  { %2109 = vmatmul.mubr.msk.f32.vlgmr.msra.gmra.mrb[6].mxu1 %vm569_vm14, %v629_v20  ;;  %2263 = vmatprep.subr.bf16.mxu1 %v2417_v48 }
 0x35a   :  { %2265 = vmatpush3.bf16.msra.mxu1 %v2586_v53  ;;  %2117 = vmatprep.mubr.msk.f32.mxu1 %vm2419_vm15, %v2418_v6 }
 0x35b   :  { %2115 = vmatprep.subr.mxu1 %v2418_v6 }
 0x35e   :  { %2116 = vmatpush3.msra.mxu1 %v2590_v57 }
 0x35f   :  { %2118 = vmatmul.mubr.msk.f32.vlgmr.msra.gmra.mrb[8].mxu1 %vm569_vm14, %v612_v22  ;;  %2266 = vmatprep.subr.bf16.mxu1 %v2417_v48 }
 0x360   :  { %2268 = vmatpush3.bf16.msra.mxu1 %v2601_v13  ;;  %2126 = vmatprep.mubr.msk.f32.mxu1 %vm2419_vm15, %v2418_v6  ;;  %v628_v13 = vcombine.high %v612_v22, %v612_v22 }
 0x361   :  { %2124 = vmatprep.subr.mxu1 %v2418_v6 }
 0x364   :  { %2125 = vmatpush3.msra.mxu1 %v2597_v7  ;;  %v630_v7 = vcombine.high %v626_v26, %v626_v26 }
 0x365   :  { %2127 = vmatmul.mubr.msk.f32.vlgmr.msra.gmra.mrb[10].mxu1 %vm569_vm14, %v626_v26  ;;  %2269 = vmatprep.subr.bf16.mxu1 %v2417_v48 }
 0x366   :  { %2271 = vmatpush3.bf16.msra.mxu1 %v2610_v23  ;;  %2135 = vmatprep.mubr.msk.f32.mxu1 %vm2419_vm15, %v2418_v6 }
 0x367   :  { %2133 = vmatprep.subr.mxu1 %v2418_v6 }
 0x36a   :  { %2134 = vmatpush3.msra.mxu1 %v2614_v27 }
 0x36b   :  { %2136 = vmatmul.mubr.msk.f32.vlgmr.msra.gmra.mrb[12].mxu1 %vm569_vm14, %v628_v13  ;;  %2272 = vmatprep.subr.bf16.mxu1 %v2417_v48 }
 0x36c   :  { %2274 = vmatpush3.bf16.msra.mxu1 %v2626_v40  ;;  %2144 = vmatprep.mubr.msk.f32.mxu1 %vm2419_vm15, %v2418_v6  ;;  %v666_v40 = vrot.slane %v650_v5, %v2714_v63 }
 0x36d   :  { %2142 = vmatprep.subr.mxu1 %v2418_v6 }
 0x370   :  { %2143 = vmatpush3.msra.mxu1 %v2623_v37  ;;  %v658_v37 = vcombine.high %v650_v5, %v650_v5 }
 0x371   :  { %2145 = vmatmul.mubr.msk.f32.vlgmr.msra.gmra.mrb[14].mxu1 %vm569_vm14, %v630_v7  ;;  %2275 = vmatprep.subr.bf16.mxu1 %v2417_v48 }
 0x372   :  { %2277 = vmatpush3.bf16.msra.mxu1 %v2536_v62  ;;  %2153 = vmatprep.mubr.msk.f32.mxu1 %vm2419_vm15, %v2418_v6  ;;  %v680_v62 = vrot.slane %v658_v37, %v2714_v63 }
 0x373   :  { %2151 = vmatprep.subr.mxu1 %v2418_v6 }
 0x376   :  { %2152 = vmatpush3.msra.mxu1 %v2541_v2  ;;  %v688_v2 = vcombine.high %v666_v40, %v666_v40 }
 0x377   :  { %2154 = vmatmul.mubr.msk.f32.vlgmr.msra.gmra.mrb[16].mxu1 %vm569_vm14, %v666_v40  ;;  %2278 = vmatprep.subr.bf16.mxu1 %v2417_v48 }
 0x378   :  { %2280 = vmatpush3.bf16.msra.mxu1 %v2559_v17  ;;  %2162 = vmatprep.mubr.msk.f32.mxu1 %vm2419_vm15, %v2418_v6  ;;  %v689_v17 = vcombine.high %v2724_v4, %v2724_v4 }
 0x379   :  { %2160 = vmatprep.subr.mxu1 %v2418_v6 }
 0x37c   :  { %2161 = vmatpush3.msra.mxu1 %v2550_v10  ;;  %v690_v10 = vcombine.high %v680_v62, %v680_v62 }
 0x37d   :  { %2163 = vmatmul.mubr.msk.f32.vlgmr.msra.gmra.mrb[18].mxu1 %vm569_vm14, %v680_v62  ;;  %2281 = vmatprep.subr.bf16.mxu1 %v2417_v48 }
 0x37e   :  { %2283 = vmatpush3.bf16.msra.mxu1 %v2564_v25  ;;  %2171 = vmatprep.mubr.msk.f32.mxu1 %vm2419_vm15, %v2418_v6 }
 0x37f   :  { %2169 = vmatprep.subr.mxu1 %v2418_v6 }
 0x382   :  { %2170 = vmatpush3.msra.mxu1 %v2568_v28 }
 0x383   :  { %2172 = vmatmul.mubr.msk.f32.vlgmr.msra.gmra.mrb[20].mxu1 %vm569_vm14, %v688_v2  ;;  %2284 = vmatprep.subr.bf16.mxu1 %v2417_v48 }
 0x384   :  { %2286 = vmatpush3.bf16.msra.mxu1 %v2579_v42  ;;  %2180 = vmatprep.mubr.msk.f32.mxu1 %vm2419_vm15, %v2418_v6 }
 0x385   :  { %2178 = vmatprep.subr.mxu1 %v2418_v6 }
 0x388   :  { %2179 = vmatpush3.msra.mxu1 %v2575_v38 }
 0x389   :  { %2181 = vmatmul.mubr.msk.f32.vlgmr.msra.gmra.mrb[22].mxu1 %vm569_vm14, %v690_v10  ;;  %2287 = vmatprep.subr.bf16.mxu1 %v2417_v48 }
 0x38a   :  { %2289 = vmatpush3.bf16.msra.mxu1 %v2586_v53  ;;  %2189 = vmatprep.mubr.msk.f32.mxu1 %vm2419_vm15, %v2418_v6 }
 0x38b   :  { %2187 = vmatprep.subr.mxu1 %v2418_v6 }
 0x38e   :  { %2188 = vmatpush3.msra.mxu1 %v2590_v57 }
 0x38f   :  { %2190 = vmatmul.mubr.msk.f32.vlgmr.msra.gmra.mrb[24].mxu1 %vm569_vm14, %v2724_v4  ;;  %2293 = vmatprep.subr.bf16.mxu1 %v2417_v48 }
 0x390   :  { %2295 = vmatpush3.bf16.msra.mxu1 %v2610_v23  ;;  %2207 = vmatprep.mubr.msk.f32.mxu1 %vm2419_vm15, %v2418_v6 }
 0x391   :  { %2205 = vmatprep.subr.mxu1 %v2418_v6 }
 0x394   :  { %2206 = vmatpush3.msra.mxu1 %v2614_v27 }
 0x395   :  { %2208 = vmatmul.mubr.msk.f32.vlgmr.msra.gmra.mrb[26].mxu1 %vm569_vm14, %v689_v17 }
 0x41a   :  { %v760_v25 = vpop.f32.mrb[0].mxu1 }
 0x41b   :  { %v2083_v28 = vpop.f32.mrb[1].mxu1 }
 0x41d   :  { %v1696_v38 = vpop.f32.mrb[24].mxu0 }
 0x41e   :  { %v2200_v42 = vpop.f32.mrb[25].mxu0 }
 0x420   :  { %v832_v53 = vpop.f32.mrb[2].mxu1 }
 0x421   :  { %v2092_v48 = vpop.f32.mrb[3].mxu1 }
 0x423   :  { %v1840_v57 = vpop.f32.mrb[26].mxu0 }
 0x424   :  { %v2218_v23 = vpop.f32.mrb[27].mxu0 }
 0x426   :  { %v904_v8 = vpop.f32.mrb[4].mxu1 }
 0x427   :  { %v2101_v29 = vpop.f32.mrb[5].mxu1 }
 0x42c   :  { %v976_v30 = vpop.f32.mrb[6].mxu1 }
 0x42d   :  { %v2110_v12 = vpop.f32.mrb[7].mxu1 }
 0x432   :  { %v1048_v6 = vpop.f32.mrb[8].mxu1 }
 0x433   :  { %v2119_v31 = vpop.f32.mrb[9].mxu1 }
 0x438   :  { %v1120_v32 = vpop.f32.mrb[10].mxu1 }
 0x439   :  { %v1849_v33 = vmul.f32 %v1696_v38, %v1120_v32  ;;  %v2128_v54 = vpop.f32.mrb[11].mxu1 }
 0x43b   :  { %v1868_v11 = vrot.slane %v1849_v33, 3 }
 0x43e   :  { %v1192_v27 = vpop.f32.mrb[12].mxu1 }
 0x43f   :  { %v2137_v34 = vpop.f32.mrb[13].mxu1 }
 0x444   :  { %v1264_v35 = vpop.f32.mrb[14].mxu1 }
 0x445   :  { %v1851_v36 = vmul.f32 %v1840_v57, %v1264_v35  ;;  %v2146_v15 = vpop.f32.mrb[15].mxu1 }
 0x447   :  { %v1872_v21 = vrot.slane %v1851_v36, 1 }
 0x44a   :  { %v1336_v39 = vpop.f32.mrb[16].mxu1 }
 0x44b   :  { %v1844_v41 = vmul.f32 %v1336_v39, %v760_v25  ;;  %v2155_v43 = vpop.f32.mrb[17].mxu1 }
 0x450   :  { %v1408_v49 = vpop.f32.mrb[18].mxu1 }
 0x451   :  { %v1845_v44 = vmul.f32 %v1408_v49, %v832_v53  ;;  %v2164_v45 = vpop.f32.mrb[19].mxu1 }
 0x453   :  { %v1860_v46 = vrot.slane %v1845_v44, 7 }
 0x455   :  { %v1861_v47 = vsel %vm550_vm2, %v1860_v46, %v1844_v41 }
 0x456   :  { %v1480_v50 = vpop.f32.mrb[20].mxu1 }
 0x457   :  { %v1846_v51 = vmul.f32 %v1480_v50, %v904_v8  ;;  %v2173_v52 = vpop.f32.mrb[21].mxu1 }
 0x459   :  { %v1862_v55 = vrot.slane %v1846_v51, 6 }
 0x45b   :  { %v1863_v63 = vsel %vm552_vm3, %v1862_v55, %v1861_v47 }
 0x45c   :  { %v1552_v56 = vpop.f32.mrb[22].mxu1 }
 0x45d   :  { %v1847_v58 = vmul.f32 %v1552_v56, %v976_v30  ;;  %v2182_v59 = vpop.f32.mrb[23].mxu1 }
 0x45f   :  { %v1864_v60 = vrot.slane %v1847_v58, 5 }
 0x461   :  { %v1865_v61 = vsel %vm554_vm4, %v1864_v60, %v1863_v63 }
 0x462   :  { %v1624_v9 = vpop.f32.mrb[24].mxu1 }
 0x463   :  { %v1848_v1 = vmul.f32 %v1624_v9, %v1048_v6  ;;  %v2191_v3 = vpop.f32.mrb[25].mxu1 }
 0x465   :  { %v1866_v4 = vrot.slane %v1848_v1, 4 }
 0x467   :  { %v1867_v0 = vsel %vm556_vm5, %v1866_v4, %v1865_v61 }
 0x468   :  { %v1768_v14 = vpop.f32.mrb[26].mxu1  ;;  %v1869_v16 = vsel %vm558_vm8, %v1868_v11, %v1867_v0 }
 0x469   :  { %v1850_v18 = vmul.f32 %v1768_v14, %v1192_v27  ;;  %v2209_v19 = vpop.f32.mrb[27].mxu1 }
 0x46b   :  { %v1870_v20 = vrot.slane %v1850_v18, 2 }
 0x46d   :  { %v1871_v22 = vsel %vm560_vm10, %v1870_v20, %v1869_v16 }
 0x46e   :  { %v1873_v24 = vsel %vm562_vm11, %v1872_v21, %v1871_v22 }
 0x46f   :  { %1875 = vadd.xlane.f32.xlu0 %v1873_v24 }
 0x4fc   :  { %v1876_v26 = vpop.xlane.xlu0 %1875 }
 0x4fd   :  { %1878 = vst.msk [vmem:[%s2851_s5] sm:$0xff] %vm1877_vm0, %v1876_v26 }
 0x4fe   :  { %1883 = vsyncpa [#allocation3], 1 }
 0x4ff   :  { %1884 = vsyncpa [#allocation5], 1 }
 0x500   :  { %1885 = vsyncpa [#allocation8], 1 }

</bundles_post_ra>
